<compile_context>
chip_gen: v7x
topology: tpu7x:2x2x1
jax: 0.10.0
libtpu: 0.0.40
codegen_flags: <defaults>
</compile_context>

<pallas_src>
import functools

import jax
import jax.numpy as jnp
from jax import lax
from jax.experimental import pallas as pl
from jax.experimental.pallas import tpu as pltpu


def conv_block_kernel(x_ref, w_ref, b_ref, o_ref, *, rows_per_image, pooling):
    """Whole problem in one invocation (everything resident in VMEM).

    x_ref: (R, K)    R = N*(H/2) rows, K = 2*W*Cin lanes (h-parity folded), bf16
    w_ref: (K, 3*L)  banded conv weight, L = 2*W*Cout; the three L-wide column
                     blocks are the contributions of input row r to output rows
                     r+1 / r / r-1 (kh taps split by row offset)
    b_ref: (1, L)    bias broadcast over (h-parity, w, cout) lanes, f32
    o_ref: (R, L//4) pooled output, lanes = (wo, cout)            if pooling
           (R, L)    conv+ReLU output, lanes = (p_h, w, cout)     otherwise
    """
    R = x_ref.shape[0]
    L = b_ref.shape[1]

    # Single fused MXU contraction: kw taps + W zero-padding live in the weight.
    y = jnp.dot(x_ref[...], w_ref[...], preferred_element_type=jnp.float32)

    y_down = y[:, 0 * L:1 * L]   # input row r feeds output row r+1 (kh=0 taps)
    y_keep = y[:, 1 * L:2 * L]   # input row r feeds output row r
    y_up = y[:, 2 * L:3 * L]     # input row r feeds output row r-1 (kh=2 taps)

    # kh taps across folded rows: shift the matmul results by one row and mask
    # the image borders (this replaces H zero-padding).  Shifts are an explicit
    # slice + sublane concat (unambiguous, cheap at 2 vregs/row-block).
    zrow = jnp.zeros((1, L), jnp.float32)
    recv_from_above = jnp.concatenate([zrow, y_down[:R - 1, :]], axis=0)
    recv_from_below = jnp.concatenate([y_up[1:, :], zrow], axis=0)

    row_in_img = lax.broadcasted_iota(jnp.int32, (R, L), 0) % rows_per_image
    conv = (y_keep
            + jnp.where(row_in_img == 0, 0.0, recv_from_above)
            + jnp.where(row_in_img == rows_per_image - 1, 0.0, recv_from_below))

    # bias (read once) + ReLU, fused.
    z = jnp.maximum(conv + b_ref[...], 0.0)

    if pooling:
        # MaxPool2d(2,2): both reductions are lane-half maxes because the
        # banded-weight column order is (h-parity, w-parity, wo, cout).
        half = L // 2
        t = jnp.maximum(z[:, :half], z[:, half:])        # pool over h parity
        quart = half // 2
        o_ref[...] = jnp.maximum(t[:, :quart], t[:, quart:]).astype(o_ref.dtype)
    else:
        o_ref[...] = z.astype(o_ref.dtype)


def _build_banded_weight(w_oihw, *, width, pooling, mxu_dtype):
    """Fold kw taps + W zero-padding of the 3x3 conv into a banded GEMM weight.

    Returns (2*W*Cin, 3*2*W*Cout):
      rows    = input lane  (h-parity, w_in, cin)
      columns = (row offset in {-1,0,+1}) x output lane
                (h-parity, (w-parity, wo) | w, cout)
    """
    Cout, Cin, KH, KW = w_oihw.shape
    W = width
    wt = jnp.transpose(w_oihw, (2, 3, 1, 0)).astype(jnp.float32)  # (KH,KW,Cin,Cout)

    dr = jnp.arange(3) - 1                                        # input row - output row
    p_in = jnp.arange(2)
    p_out = jnp.arange(2)
    # conv: out[h] uses in[h + kh - 1]; with h = 2*row + parity this pins kh:
    kh_tgt = 2 * dr[:, None, None] + p_in[None, :, None] - p_out[None, None, :] + 1
    kw_tgt = jnp.arange(W)[:, None] - jnp.arange(W)[None, :] + 1  # (w_in, w_out)
    # One-hot selection; out-of-range taps match nothing -> zero = W padding.
    kh_sel = (kh_tgt[..., None] == jnp.arange(KH)).astype(jnp.float32)   # (3,2,2,KH)
    kw_sel = (kw_tgt[..., None] == jnp.arange(KW)).astype(jnp.float32)   # (W,W,KW)

    # bw[dr, p_in, p_out, w_in, w_out, cin, cout]
    bw = jnp.einsum('aijh,uvw,hwco->aijuvco', kh_sel, kw_sel, wt)
    bw = jnp.transpose(bw, (1, 3, 5, 0, 2, 4, 6))  # (p_in, w_in, cin, dr, p_out, w_out, cout)
    if pooling:
        # Column order (p_h, p_w, wo, cout) -> both pool reductions are lane-half maxes.
        bw = bw.reshape(2, W, Cin, 3, 2, W // 2, 2, Cout)
        bw = jnp.transpose(bw, (0, 1, 2, 3, 4, 6, 5, 7))
    return bw.reshape(2 * W * Cin, 3 * 2 * W * Cout).astype(mxu_dtype)


@functools.partial(jax.jit, static_argnames=("pooling", "padding", "stride", "mxu_dtype"))
def conv_block(x_nchw, w_oihw, b=None, *, pooling=True, padding=1, stride=1,
               mxu_dtype=jnp.bfloat16):
    """ConvBlock forward: NCHW in -> NCHW out."""
    N, Cin, H, W = x_nchw.shape
    Cout, cin_w, KH, KW = w_oihw.shape
    assert cin_w == Cin and KH == 3 and KW == 3 and padding == 1 and stride == 1
    assert H % 2 == 0 and W % 2 == 0
    Hh = H // 2                                    # rows per image after h-parity fold

    if b is None:
        b = jnp.zeros((Cout,), jnp.float32)

    # Wrapper-side layout plumbing (not compute): NCHW -> NHWC, fold
    # (h-parity, w, cin) into lanes, cast MXU operands to bf16.
    x2d = jnp.transpose(x_nchw, (0, 2, 3, 1)).reshape(N * Hh, 2 * W * Cin)
    x2d = x2d.astype(mxu_dtype)
    bw = _build_banded_weight(w_oihw, width=W, pooling=pooling, mxu_dtype=mxu_dtype)
    bias_row = jnp.tile(b.astype(jnp.float32), 2 * W).reshape(1, 2 * W * Cout)

    L = 2 * W * Cout
    out_cols = (W // 2) * Cout if pooling else L
    vmem = pl.BlockSpec(memory_space=pltpu.MemorySpace.VMEM)
    out2d = pl.pallas_call(
        functools.partial(conv_block_kernel, rows_per_image=Hh, pooling=pooling),
        out_shape=jax.ShapeDtypeStruct((N * Hh, out_cols), x_nchw.dtype),
        # No grid: the whole problem (<0.3 MB incl. the banded weight) lives in
        # VMEM as single blocks; per-grid-step overhead would dominate at N=2.
        in_specs=[vmem, vmem, vmem],
        out_specs=vmem,
    )(x2d, bw, bias_row)

    if pooling:
        out = out2d.reshape(N, Hh, W // 2, Cout)               # (N, Ho, Wo, Cout)
    else:
        out = out2d.reshape(N, Hh, 2, W, Cout).reshape(N, H, W, Cout)
    return jnp.transpose(out, (0, 3, 1, 2))                    # back to NCHW


def reference(x_nchw, w_oihw, b, *, pooling=True):
    """Pure-JAX reference matching PyTorch semantics (f32-accurate conv)."""
    y = lax.conv_general_dilated(
        x_nchw, w_oihw, window_strides=(1, 1), padding=((1, 1), (1, 1)),
        dimension_numbers=("NCHW", "OIHW", "NCHW"),
        precision=lax.Precision.HIGHEST)
    y = jnp.maximum(y + b.reshape(1, -1, 1, 1), 0.0)
    if pooling:
        y = lax.reduce_window(y, -jnp.inf, lax.max,
                              window_dimensions=(1, 1, 2, 2),
                              window_strides=(1, 1, 2, 2),
                              padding="VALID")
    return y


if __name__ == "__main__":
    # ConvBlock(in_channels=4, out_channels=8, pooling=True)
    N, Cin, H, W = 2, 4, 16, 16
    Cout, KH, KW = 8, 3, 3

    key = jax.random.PRNGKey(0)
    kx, kw_, kb = jax.random.split(key, 3)
    x = jax.random.normal(kx, (N, Cin, H, W), dtype=jnp.float32)
    w = jax.random.normal(kw_, (Cout, Cin, KH, KW), dtype=jnp.float32) * 0.1
    b = jax.random.normal(kb, (Cout,), dtype=jnp.float32) * 0.1

    # The kernel's MXU contraction uses bf16 operands (f32 accumulation), per
    # the perf review; the tight reference therefore uses bf16-rounded x/w with
    # an f32-accurate conv so only f32 summation-order noise remains.
    xr = x.astype(jnp.bfloat16).astype(jnp.float32)
    wr = w.astype(jnp.bfloat16).astype(jnp.float32)

    # pooling=True path (module default)
    out = jax.block_until_ready(conv_block(x, w, b, pooling=True))
    ref = jax.block_until_ready(reference(xr, wr, b, pooling=True))
    assert out.shape == (N, Cout, H // 2, W // 2), out.shape
    err = float(jnp.max(jnp.abs(out - ref)))
    assert err < 1e-4, err

    # pooling=False path (nn.Identity)
    out_np = jax.block_until_ready(conv_block(x, w, b, pooling=False))
    ref_np = jax.block_until_ready(reference(xr, wr, b, pooling=False))
    assert out_np.shape == (N, Cout, H, W), out_np.shape
    err_np = float(jnp.max(jnp.abs(out_np - ref_np)))
    assert err_np < 1e-4, err_np

    print("KERNEL_OK")
</pallas_src>

<mosaic_0001>
module attributes {stable_mosaic.version = 11 : i64} {
  func.func @conv_block_kernel(%arg0: memref<16x128xbf16, #tpu.memory_space<vmem>>, %arg1: memref<128x768xbf16, #tpu.memory_space<vmem>>, %arg2: memref<1x256xf32, #tpu.memory_space<vmem>>, %arg3: memref<16x64xf32, #tpu.memory_space<vmem>>) attributes {dimension_semantics = [], scalar_prefetch = 0 : i64, scratch_operands = 0 : i64, tpu.core_type = #tpu.core_type<tc>} {
    %c0 = arith.constant 0 : index
    %c0_0 = arith.constant 0 : index
    %0 = vector.load %arg0[%c0, %c0_0] : memref<16x128xbf16, #tpu.memory_space<vmem>>, vector<16x128xbf16>
    %c0_1 = arith.constant 0 : index
    %c0_2 = arith.constant 0 : index
    %1 = vector.load %arg1[%c0_1, %c0_2] : memref<128x768xbf16, #tpu.memory_space<vmem>>, vector<128x768xbf16>
    %cst = arith.constant dense<0.000000e+00> : vector<16x768xf32>
    %2 = tpu.matmul %0, %1, %cst {dimension_numbers = #tpu.dot_dimension_numbers<[1], [0], [0], [1], [0, 0, 1, 1], [], []>} : vector<16x128xbf16>, vector<128x768xbf16>, vector<16x768xf32> -> vector<16x768xf32>
    %3 = vector.extract_strided_slice %2 {offsets = [0, 0], sizes = [16, 256], strides = [1, 1]} : vector<16x768xf32> to vector<16x256xf32>
    %4 = vector.extract_strided_slice %2 {offsets = [0, 256], sizes = [16, 256], strides = [1, 1]} : vector<16x768xf32> to vector<16x256xf32>
    %5 = vector.extract_strided_slice %2 {offsets = [0, 512], sizes = [16, 256], strides = [1, 1]} : vector<16x768xf32> to vector<16x256xf32>
    %cst_3 = arith.constant 0.000000e+00 : f32
    %6 = vector.broadcast %cst_3 : f32 to vector<1x256xf32>
    %7 = vector.extract_strided_slice %3 {offsets = [0, 0], sizes = [15, 256], strides = [1, 1]} : vector<16x256xf32> to vector<15x256xf32>
    %8 = tpu.concatenate %6, %7 in 0 : vector<1x256xf32>, vector<15x256xf32> -> vector<16x256xf32>
    %9 = vector.extract_strided_slice %5 {offsets = [1, 0], sizes = [15, 256], strides = [1, 1]} : vector<16x256xf32> to vector<15x256xf32>
    %10 = tpu.concatenate %9, %6 in 0 : vector<15x256xf32>, vector<1x256xf32> -> vector<16x256xf32>
    %11 = tpu.iota {dimensions = array<i32: 0>} : vector<16x256xi32>
    %c8_i32 = arith.constant 8 : i32
    %c0_i32 = arith.constant 0 : i32
    %12 = arith.cmpi eq, %c8_i32, %c0_i32 : i32
    %c1_i32 = arith.constant 1 : i32
    %13 = arith.select %12, %c1_i32, %c8_i32 : i32
    %14 = vector.broadcast %13 : i32 to vector<16x256xi32>
    %15 = arith.remsi %11, %14 : vector<16x256xi32>
    %c0_i32_4 = arith.constant 0 : i32
    %16 = vector.broadcast %c0_i32_4 : i32 to vector<16x256xi32>
    %17 = arith.cmpi ne, %15, %16 : vector<16x256xi32>
    %c0_i32_5 = arith.constant 0 : i32
    %18 = vector.broadcast %c0_i32_5 : i32 to vector<16x256xi32>
    %19 = arith.cmpi slt, %15, %18 : vector<16x256xi32>
    %c0_i32_6 = arith.constant 0 : i32
    %20 = arith.cmpi slt, %13, %c0_i32_6 : i32
    %21 = vector.broadcast %20 : i1 to vector<16x256xi1>
    %22 = vector.broadcast %21 : vector<16x256xi1> to vector<16x256xi1>
    %23 = arith.xori %19, %22 : vector<16x256xi1>
    %24 = arith.andi %23, %17 : vector<16x256xi1>
    %25 = vector.broadcast %13 : i32 to vector<16x256xi32>
    %26 = arith.addi %15, %25 : vector<16x256xi32>
    %27 = arith.select %24, %26, %15 : vector<16x256xi1>, vector<16x256xi32>
    %c0_i32_7 = arith.constant 0 : i32
    %28 = vector.broadcast %c0_i32_7 : i32 to vector<16x256xi32>
    %29 = arith.cmpi eq, %27, %28 : vector<16x256xi32>
    %cst_8 = arith.constant 0.000000e+00 : f32
    %30 = vector.broadcast %cst_8 : f32 to vector<16x256xf32>
    %31 = arith.select %29, %30, %8 : vector<16x256xi1>, vector<16x256xf32>
    %32 = arith.addf %4, %31 : vector<16x256xf32>
    %c7_i32 = arith.constant 7 : i32
    %33 = vector.broadcast %c7_i32 : i32 to vector<16x256xi32>
    %34 = arith.cmpi eq, %27, %33 : vector<16x256xi32>
    %cst_9 = arith.constant 0.000000e+00 : f32
    %35 = vector.broadcast %cst_9 : f32 to vector<16x256xf32>
    %36 = arith.select %34, %35, %10 : vector<16x256xi1>, vector<16x256xf32>
    %37 = arith.addf %32, %36 : vector<16x256xf32>
    %c0_10 = arith.constant 0 : index
    %c0_11 = arith.constant 0 : index
    %38 = vector.load %arg2[%c0_10, %c0_11] : memref<1x256xf32, #tpu.memory_space<vmem>>, vector<1x256xf32>
    %39 = vector.broadcast %38 : vector<1x256xf32> to vector<16x256xf32>
    %40 = arith.addf %37, %39 : vector<16x256xf32>
    %cst_12 = arith.constant 0.000000e+00 : f32
    %41 = vector.broadcast %cst_12 : f32 to vector<16x256xf32>
    %42 = arith.maximumf %40, %41 : vector<16x256xf32>
    %43 = vector.extract_strided_slice %42 {offsets = [0, 0], sizes = [16, 128], strides = [1, 1]} : vector<16x256xf32> to vector<16x128xf32>
    %44 = vector.extract_strided_slice %42 {offsets = [0, 128], sizes = [16, 128], strides = [1, 1]} : vector<16x256xf32> to vector<16x128xf32>
    %45 = arith.maximumf %43, %44 : vector<16x128xf32>
    %46 = vector.extract_strided_slice %45 {offsets = [0, 0], sizes = [16, 64], strides = [1, 1]} : vector<16x128xf32> to vector<16x64xf32>
    %47 = vector.extract_strided_slice %45 {offsets = [0, 64], sizes = [16, 64], strides = [1, 1]} : vector<16x128xf32> to vector<16x64xf32>
    %48 = arith.maximumf %46, %47 : vector<16x64xf32>
    %c0_13 = arith.constant 0 : index
    %c0_14 = arith.constant 0 : index
    %49 = vector.load %arg3[%c0_13, %c0_14] : memref<16x64xf32, #tpu.memory_space<vmem>>, vector<16x64xf32>
    tpu.vector_store %arg3[%c0_13, %c0_14], %48 {strides = array<i32>} : memref<16x64xf32, #tpu.memory_space<vmem>>, vector<16x64xf32>,
    return
  }
}

</mosaic_0001>

<bundles_post_ra>
// kernel: tile.8
= control target key start
LH: loop header
LB: loop body
LE: loop exit
PB: predicated region body
PF: predicated region fallthrough
CT: control target
= control target key end

     0   :  { %s40_s0 = inlined_call_operand.vmem [shape: f32[8], index: 0, kind: input, shape index: {}]   ;;  %s41_s1 = inlined_call_operand.vmem [shape: f32[32,8], index: 1, kind: output, shape index: {}]  }
   0x1   :  { %v4_v0 = vld [vmem:[%s40_s0] ss:$0 sm:$0xff] }
   0x2   :  { %5 = vst [vmem:[%s41_s1] sm:$0xff] %v4_v0  ;;  %12 = vst [vmem:[%s41_s1 + $0x8] sm:$0xff] %v4_v0 }
   0x3   :  { %13 = vst [vmem:[%s41_s1 + $0x10] sm:$0xff] %v4_v0  ;;  %14 = vst [vmem:[%s41_s1 + $0x18] sm:$0xff] %v4_v0 }

// kernel: tile.9
= control target key start
LH: loop header
LB: loop body
LE: loop exit
PB: predicated region body
PF: predicated region fallthrough
CT: control target
= control target key end

     0   :  { %s7_s6 = smov 3  ;;  %s21_s9 = smov 3  ;;  %vm4_vm0 = vcmask 64512   ;;  %vm11_vm1 = vcmask 1048512   ;;  %vm18_vm2 = vcmask 982912   ;;  %vm25_vm3 = vcmask 917312   ;;  %s232_s0 = inlined_call_operand.vmem [shape: f32[32,8], index: 0, kind: input, shape index: {}]   ;;  %s233_s1 = inlined_call_operand.vmem [shape: f32[1,256], index: 1, kind: output, shape index: {}]  }
   0x1   :  { %v122_v0 = vld [vmem:[%s232_s0 + $0xf] ss:$16 sm:%s7_s6]   ;;  %s153_s10 = smov 120   ;;  %v124_v1 = vld [vmem:[%s232_s0 + $0xd] ss:$16 sm:%s21_s9]   ;;  %s14_s13 = smov 3 }
   0x2   :  { %9 = vrot.lane.b32.xlu0 %v122_v0, %s153_s10  ;;  %s154_s14 = smov 104   ;;  %v123_v2 = vld [vmem:[%s232_s0 + $0xe] ss:$16 sm:%s14_s13]   ;;  %s28_s17 = smov 3  ;;  %vm32_vm4 = vcmask 851712   ;;  %vm39_vm5 = vcmask 786112  }
   0x3   :  { %23 = vrot.lane.b32.xlu1 %v124_v1, %s154_s14  ;;  %v125_v3 = vld [vmem:[%s232_s0 + $0xc] ss:$16 sm:%s28_s17]   ;;  %s35_s20 = smov 3  ;;  %s42_s21 = smov 3  ;;  %vm46_vm6 = vcmask 720512   ;;  %vm53_vm7 = vcmask 654912  }
   0x4   :  { %s155_s22 = smov 112   ;;  %s156_s23 = smov 96   ;;  %v126_v4 = vld [vmem:[%s232_s0 + $0xb] ss:$16 sm:%s35_s20]   ;;  %v127_v5 = vld [vmem:[%s232_s0 + $0xa] ss:$16 sm:%s42_s21]  }
   0x5   :  { %s49_s28 = smov 3  ;;  %s56_s29 = smov 3  ;;  %vm60_vm8 = vcmask 589312   ;;  %vm67_vm9 = vcmask 523712   ;;  %vm74_vm10 = vcmask 458112   ;;  %vm81_vm11 = vcmask 392512  }
   0x6   :  { %16 = vrot.lane.b32.xlu0 %v123_v2, %s155_s22  ;;  %s157_s30 = smov 88   ;;  %s158_s2 = smov 80   ;;  %v128_v6 = vld [vmem:[%s232_s0 + $0x9] ss:$16 sm:%s49_s28]   ;;  %vm88_vm12 = vcmask 326912   ;;  %vm95_vm13 = vcmask 261312  }
   0x7   :  { %30 = vrot.lane.b32.xlu1 %v125_v3, %s156_s23  ;;  %v129_v7 = vld [vmem:[%s232_s0 + $0x8] ss:$16 sm:%s56_s29]   ;;  %s63_s7 = smov 3  ;;  %s70_s8 = smov 3  ;;  %vm102_vm14 = vcmask 195712   ;;  %vm109_vm15 = vcmask 130112  }
   0x8   :  { %s159_s9 = smov 72   ;;  %s160_s10 = smov 64   ;;  %v130_v8 = vld [vmem:[%s232_s0 + $0x7] ss:$16 sm:%s63_s7]   ;;  %v131_v9 = vld [vmem:[%s232_s0 + $0x6] ss:$16 sm:%s70_s8]  }
   0x9   :  { %s2_s13 = smov 3  ;;  %s77_s16 = smov 3 }
   0xa   :  { %37 = vrot.lane.b32.xlu0 %v126_v4, %s157_s30  ;;  %v3_v10 = vld [vmem:[%s232_s0] ss:$16 sm:%s2_s13]   ;;  %s84_s19 = smov 3  ;;  %s161_s20 = smov 56  }
   0xb   :  { %44 = vrot.lane.b32.xlu1 %v127_v5, %s158_s2  ;;  %5 = vst.msk [vmem:[#allocation0] ss:$8 sm:$0x3] %vm4_vm0, %v3_v10   ;;  %s162_s21 = smov 48   ;;  %v132_v11 = vld [vmem:[%s232_s0 + $0x5] ss:$16 sm:%s77_s16]  }
   0xc   :  { %v133_v12 = vld [vmem:[%s232_s0 + $0x4] ss:$16 sm:%s84_s19]   ;;  %s91_s26 = smov 3  ;;  %s98_s27 = smov 3 }
   0xd   :  { %s163_s28 = smov 40   ;;  %s164_s29 = smov 32   ;;  %v134_v13 = vld [vmem:[%s232_s0 + $0x3] ss:$16 sm:%s91_s26]   ;;  %v135_v14 = vld [vmem:[%s232_s0 + $0x2] ss:$16 sm:%s98_s27]  }
   0xe   :  { %51 = vrot.lane.b32.xlu0 %v128_v6, %s159_s9  ;;  %s105_s5 = smov 3  ;;  %s165_s6 = smov 24  }
   0xf   :  { %58 = vrot.lane.b32.xlu1 %v129_v7, %s160_s10  ;;  %s166_s7 = smov 16   ;;  %v136_v15 = vld [vmem:[%s232_s0 + $0x1] ss:$16 sm:%s105_s5]   ;;  %s167_s0 = smov 8  }
  0x12   :  { %65 = vrot.lane.b32.xlu0 %v130_v8, %s161_s20 }
  0x13   :  { %72 = vrot.lane.b32.xlu1 %v131_v9, %s162_s21 }
  0x16   :  { %79 = vrot.lane.b32.xlu0 %v132_v11, %s163_s28 }
  0x17   :  { %86 = vrot.lane.b32.xlu1 %v133_v12, %s164_s29 }
  0x1a   :  { %93 = vrot.lane.b32.xlu0 %v134_v13, %s165_s6 }
  0x1b   :  { %100 = vrot.lane.b32.xlu1 %v135_v14, %s166_s7 }
  0x1e   :  { %107 = vrot.lane.b32.xlu0 %v136_v15, %s167_s0 }
  0x74   :  { %v10_v16 = vpop.permute.xlu0 %9  }
  0x75   :  { %12 = vst.msk [vmem:[#allocation0] ss:$8 sm:$0x3] %vm11_vm1, %v10_v16   ;;  %v24_v17 = vpop.permute.xlu1 %23  }
  0x78   :  { %v17_v18 = vpop.permute.xlu0 %16  }
  0x79   :  { %19 = vst.msk [vmem:[#allocation0] ss:$8 sm:$0x3] %vm18_vm2, %v17_v18   ;;  %v31_v19 = vpop.permute.xlu1 %30  }
  0x7a   :  { %26 = vst.msk [vmem:[#allocation0] ss:$8 sm:$0x3] %vm25_vm3, %v24_v17  }
  0x7b   :  { %33 = vst.msk [vmem:[#allocation0] ss:$8 sm:$0x3] %vm32_vm4, %v31_v19  }
  0x7c   :  { %v38_v20 = vpop.permute.xlu0 %37  }
  0x7d   :  { %40 = vst.msk [vmem:[#allocation0] ss:$8 sm:$0x3] %vm39_vm5, %v38_v20   ;;  %v45_v21 = vpop.permute.xlu1 %44  }
  0x7e   :  { %47 = vst.msk [vmem:[#allocation0] ss:$8 sm:$0x3] %vm46_vm6, %v45_v21  }
  0x80   :  { %v52_v22 = vpop.permute.xlu0 %51  }
  0x81   :  { %54 = vst.msk [vmem:[#allocation0] ss:$8 sm:$0x3] %vm53_vm7, %v52_v22   ;;  %v59_v23 = vpop.permute.xlu1 %58  }
  0x82   :  { %61 = vst.msk [vmem:[#allocation0] ss:$8 sm:$0x3] %vm60_vm8, %v59_v23  }
  0x84   :  { %v66_v24 = vpop.permute.xlu0 %65  }
  0x85   :  { %68 = vst.msk [vmem:[#allocation0] ss:$8 sm:$0x3] %vm67_vm9, %v66_v24   ;;  %v73_v25 = vpop.permute.xlu1 %72  }
  0x86   :  { %75 = vst.msk [vmem:[#allocation0] ss:$8 sm:$0x3] %vm74_vm10, %v73_v25  }
  0x88   :  { %v80_v26 = vpop.permute.xlu0 %79  }
  0x89   :  { %82 = vst.msk [vmem:[#allocation0] ss:$8 sm:$0x3] %vm81_vm11, %v80_v26   ;;  %v87_v27 = vpop.permute.xlu1 %86  }
  0x8a   :  { %89 = vst.msk [vmem:[#allocation0] ss:$8 sm:$0x3] %vm88_vm12, %v87_v27  }
  0x8c   :  { %v94_v28 = vpop.permute.xlu0 %93  }
  0x8d   :  { %96 = vst.msk [vmem:[#allocation0] ss:$8 sm:$0x3] %vm95_vm13, %v94_v28   ;;  %v101_v29 = vpop.permute.xlu1 %100  }
  0x8e   :  { %103 = vst.msk [vmem:[#allocation0] ss:$8 sm:$0x3] %vm102_vm14, %v101_v29  }
  0x90   :  { %v108_v30 = vpop.permute.xlu0 %107  }
  0x91   :  { %110 = vst.msk [vmem:[#allocation0] ss:$8 sm:$0x3] %vm109_vm15, %v108_v30  }
  0x98   :  { %v114_v31 = vld [vmem:[#allocation0] sm:$0x1]  ;;  %v118_v32 = vld [vmem:[#allocation0 + $0x8] sm:$0x1] }
  0x99   :  { %116 = vst [vmem:[%s233_s1] sm:$0x1] %v114_v31  ;;  %137 = vst [vmem:[%s233_s1 + $0x1] sm:$0x1] %v118_v32 }

// kernel: conv_block.1
= control target key start
LH: loop header
LB: loop body
LE: loop exit
PB: predicated region body
PF: predicated region fallthrough
CT: control target
= control target key end

     0   :  { %v684_v1 = vmov 0   ;;  %v474_v50 = vlaneseq  ;;  %vm444_vm0 = vcmask 1040384   ;;  %vm461_vm3 = vcmask 1046528   ;;  %s897_s1 = inlined_call_operand.vmem [shape: bf16[128,768], index: 1, kind: input, shape index: {}]   ;;  %s898_s0 = inlined_call_operand.vmem [shape: bf16[16,128], index: 0, kind: input, shape index: {}]   ;;  %s899_s2 = inlined_call_operand.vmem [shape: f32[1,256], index: 2, kind: input, shape index: {}]   ;;  %s900_s3 = inlined_call_operand.vmem [shape: f32[16,64], index: 3, kind: output, shape index: {}]  }
   0x1   :  { %v611_v0 = vld [vmem:[%s897_s1 + $0x4] ss:$24 sps:$4 sm:$0xff]   ;;  %343 = vmatprep.mubr.bf16.mxu0 %v684_v1  ;;  %386 = vmatprep.mubr.bf16.mxu1 %v684_v1  ;;  %v613_v2 = vld [vmem:[%s897_s1] ss:$24 sps:$4 sm:$0xff]   ;;  %v614_v3 = vld [vmem:[%s897_s1 + $0x34] ss:$24 sps:$4 sm:$0xff]  }
   0x2   :  { %311 = vmatprep.subr.bf16.mxu0 %v611_v0  ;;  %v616_v4 = vld [vmem:[%s897_s1 + $0xc] ss:$24 sps:$4 sm:$0xff]   ;;  %v618_v5 = vld [vmem:[%s897_s1 + $0x30] ss:$24 sps:$4 sm:$0xff]   ;;  %v622_v8 = vld [vmem:[%s897_s1 + $0x3c] ss:$24 sps:$4 sm:$0xff]  }
   0x3   :  { %312 = vmatpush1.bf16.msra.mxu0 %v613_v2  ;;  %v619_v6 = vld [vmem:[%s897_s1 + $0x8] ss:$24 sps:$4 sm:$0xff]   ;;  %v620_v7 = vld [vmem:[%s897_s1 + $0x64] ss:$24 sps:$4 sm:$0xff]   ;;  %354 = vmatprep.subr.bf16.mxu1 %v616_v4  ;;  %v625_v9 = vld [vmem:[%s897_s1 + $0x38] ss:$24 sps:$4 sm:$0xff]  }
   0x4   :  { %313 = vmatprep.subr.bf16.mxu0 %v614_v3  ;;  %355 = vmatpush1.bf16.msra.mxu1 %v619_v6  ;;  %v624_v10 = vld [vmem:[%s897_s1 + $0x60] ss:$24 sps:$4 sm:$0xff]   ;;  %v626_v11 = vld [vmem:[%s897_s1 + $0x94] ss:$24 sps:$4 sm:$0xff]   ;;  %v630_v14 = vld [vmem:[%s897_s1 + $0x90] ss:$24 sps:$4 sm:$0xff]  }
   0x5   :  { %356 = vmatprep.subr.bf16.mxu1 %v622_v8  ;;  %v628_v12 = vld [vmem:[%s897_s1 + $0x6c] ss:$24 sps:$4 sm:$0xff]   ;;  %v631_v13 = vld [vmem:[%s897_s1 + $0x68] ss:$24 sps:$4 sm:$0xff]   ;;  %v634_v15 = vld [vmem:[%s897_s1 + $0x9c] ss:$24 sps:$4 sm:$0xff]  }
   0x6   :  { %v632_v16 = vld [vmem:[%s897_s1 + $0xc4] ss:$24 sps:$4 sm:$0xff]   ;;  %v636_v17 = vld [vmem:[%s897_s1 + $0xc0] ss:$24 sps:$4 sm:$0xff]   ;;  %v638_v20 = vld [vmem:[%s897_s1 + $0xf4] ss:$24 sps:$4 sm:$0xff]  }
   0x7   :  { %314 = vmatpush1.bf16.msra.mxu0 %v618_v5  ;;  %v637_v18 = vld [vmem:[%s897_s1 + $0x98] ss:$24 sps:$4 sm:$0xff]   ;;  %v640_v19 = vld [vmem:[%s897_s1 + $0xcc] ss:$24 sps:$4 sm:$0xff]   ;;  %v643_v21 = vld [vmem:[%s897_s1 + $0xc8] ss:$24 sps:$4 sm:$0xff]  }
   0x8   :  { %315 = vmatprep.subr.bf16.mxu0 %v620_v7  ;;  %357 = vmatpush1.bf16.msra.mxu1 %v625_v9  ;;  %v642_v22 = vld [vmem:[%s897_s1 + $0xf0] ss:$24 sps:$4 sm:$0xff]   ;;  %v646_v23 = vld [vmem:[%s897_s1 + $0xfc] ss:$24 sps:$4 sm:$0xff]   ;;  %v648_v26 = vld [vmem:[%s897_s1 + $0x120] ss:$24 sps:$4 sm:$0xff]  }
   0x9   :  { %358 = vmatprep.subr.bf16.mxu1 %v628_v12  ;;  %v644_v24 = vld [vmem:[%s897_s1 + $0x124] ss:$24 sps:$4 sm:$0xff]   ;;  %v649_v25 = vld [vmem:[%s897_s1 + $0xf8] ss:$24 sps:$4 sm:$0xff]   ;;  %v650_v28 = vld [vmem:[%s897_s1 + $0x154] ss:$24 sps:$4 sm:$0xff]  }
   0xa   :  { %v652_v27 = vld [vmem:[%s897_s1 + $0x12c] ss:$24 sps:$4 sm:$0xff]   ;;  %v655_v29 = vld [vmem:[%s897_s1 + $0x128] ss:$24 sps:$4 sm:$0xff]   ;;  %v657_v31 = vld [vmem:[%s897_s1 + $0x15c] ss:$24 sps:$4 sm:$0xff]  }
   0xb   :  { %316 = vmatpush1.bf16.msra.mxu0 %v624_v10  ;;  %v654_v30 = vld [vmem:[%s897_s1 + $0x150] ss:$24 sps:$4 sm:$0xff]   ;;  %v661_v32 = vld [vmem:[%s897_s1 + $0x14] ss:$24 sps:$4 sm:$0xff]   ;;  %v656_v33 = vld [vmem:[%s898_s0] sm:$0xff]   ;;  %v475_v51 = vshrl.u32 %v474_v50, 7 }
   0xc   :  { %317 = vmatprep.subr.bf16.mxu0 %v626_v11  ;;  %359 = vmatpush1.bf16.msra.mxu1 %v631_v13  ;;  %v662_v34 = vld [vmem:[%s897_s1 + $0x158] ss:$24 sps:$4 sm:$0xff]   ;;  %v665_v36 = vld [vmem:[%s897_s1 + $0x44] ss:$24 sps:$4 sm:$0xff]   ;;  %v668_v38 = vld [vmem:[%s897_s1 + $0x74] ss:$24 sps:$4 sm:$0xff]  }
   0xd   :  { %360 = vmatprep.subr.bf16.mxu1 %v634_v15  ;;  %v659_v35 = vld [vmem:[%s897_s1 + $0x10] ss:$24 sps:$4 sm:$0xff]   ;;  %v663_v37 = vld [vmem:[%s897_s1 + $0x40] ss:$24 sps:$4 sm:$0xff]   ;;  %v671_v40 = vld [vmem:[%s897_s1 + $0xa4] ss:$24 sps:$4 sm:$0xff]  }
   0xe   :  { %v666_v39 = vld [vmem:[%s897_s1 + $0x70] ss:$24 sps:$4 sm:$0xff]   ;;  %v669_v41 = vld [vmem:[%s897_s1 + $0xa0] ss:$24 sps:$4 sm:$0xff]   ;;  %v674_v42 = vld [vmem:[%s897_s1 + $0xd4] ss:$24 sps:$4 sm:$0xff]  }
   0xf   :  { %318 = vmatpush1.bf16.msra.mxu0 %v630_v14  ;;  %v672_v43 = vld [vmem:[%s897_s1 + $0xd0] ss:$24 sps:$4 sm:$0xff]   ;;  %v677_v44 = vld [vmem:[%s897_s1 + $0x104] ss:$24 sps:$4 sm:$0xff]   ;;  %v675_v45 = vld [vmem:[%s897_s1 + $0x100] ss:$24 sps:$4 sm:$0xff]  }
  0x10   :  { %319 = vmatprep.subr.bf16.mxu0 %v632_v16  ;;  %361 = vmatpush1.bf16.msra.mxu1 %v637_v18  ;;  %v680_v46 = vld [vmem:[%s897_s1 + $0x134] ss:$24 sps:$4 sm:$0xff]   ;;  %v678_v47 = vld [vmem:[%s897_s1 + $0x130] ss:$24 sps:$4 sm:$0xff]   ;;  %v683_v48 = vld [vmem:[%s897_s1 + $0x164] ss:$24 sps:$4 sm:$0xff]  }
  0x11   :  { %362 = vmatprep.subr.bf16.mxu1 %v640_v19  ;;  %v681_v49 = vld [vmem:[%s897_s1 + $0x160] ss:$24 sps:$4 sm:$0xff]   ;;  %v476_v52 = vadd.s32 8, %v475_v51  ;;  %v481_v53 = vand.u32 7, %v475_v51  ;;  %v529_v18 = vsub.s32 1, %v475_v51  ;;  %v525_v19 = vsub.s32 0, %v475_v51 }
  0x12   :  { %vm553_vm6 = vcmask 523264  }
  0x13   :  { %320 = vmatpush1.bf16.msra.mxu0 %v636_v17  ;;  %v488_v54 = vand.u32 7, %v476_v52  ;;  %vm856_vm1 = vcmp.eq.s32.totalorder %v481_v53, 0  ;;  %vm871_vm4 = vcmp.eq.s32.totalorder %v481_v53, 7 }
  0x14   :  { %321 = vmatprep.subr.bf16.mxu0 %v638_v20  ;;  %363 = vmatpush1.bf16.msra.mxu1 %v643_v21  ;;  %v521_v21 = vld [vmem:[%s899_s2] sm:$0x3]  ;;  %s685_s2 = smov 64  }
  0x15   :  { %364 = vmatprep.subr.bf16.mxu1 %v646_v23  ;;  %vm502_vm2 = vcmp.eq.s32.totalorder %v488_v54, 0  ;;  %vm875_vm5 = vcmp.eq.s32.totalorder %v488_v54, 7 }
  0x17   :  { %322 = vmatpush1.bf16.msra.mxu0 %v642_v22 }
  0x18   :  { %323 = vmatprep.subr.bf16.mxu0 %v644_v24  ;;  %365 = vmatpush1.bf16.msra.mxu1 %v649_v25 }
  0x19   :  { %366 = vmatprep.subr.bf16.mxu1 %v652_v27 }
  0x1b   :  { %324 = vmatpush1.bf16.msra.mxu0 %v648_v26 }
  0x1c   :  { %325 = vmatprep.subr.bf16.mxu0 %v650_v28  ;;  %367 = vmatpush1.bf16.msra.mxu1 %v655_v29 }
  0x1d   :  { %368 = vmatprep.subr.bf16.mxu1 %v657_v31  ;;  %v530_v31 = vrot.slane %v521_v21, %v529_v18 }
  0x1f   :  { %326 = vmatpush1.bf16.msra.mxu0 %v654_v30 }
  0x20   :  { %397 = vmatprep.subr.bf16.mxu0 %v661_v32  ;;  %369 = vmatpush1.bf16.msra.mxu1 %v662_v34  ;;  %v526_v32 = vrot.slane %v521_v21, %v525_v19 }
  0x22   :  { %344 = vmatmul.mubr.bf16.vlgmr.msra.gmra.mrb[0].mxu0 %v656_v33 }
  0x23   :  { %398 = vmatpush1.bf16.msra.mxu0 %v659_v35  ;;  %429 = vmatprep.mubr.bf16.mxu0 %v684_v1 }
  0x24   :  { %399 = vmatprep.subr.bf16.mxu0 %v665_v36  ;;  %387 = vmatmul.mubr.bf16.vlgmr.msra.gmra.mrb[0].mxu1 %v656_v33 }
  0x27   :  { %400 = vmatpush1.bf16.msra.mxu0 %v663_v37 }
  0x28   :  { %401 = vmatprep.subr.bf16.mxu0 %v668_v38 }
  0x2b   :  { %402 = vmatpush1.bf16.msra.mxu0 %v666_v39 }
  0x2c   :  { %403 = vmatprep.subr.bf16.mxu0 %v671_v40 }
  0x2f   :  { %404 = vmatpush1.bf16.msra.mxu0 %v669_v41 }
  0x30   :  { %405 = vmatprep.subr.bf16.mxu0 %v674_v42 }
  0x33   :  { %406 = vmatpush1.bf16.msra.mxu0 %v672_v43 }
  0x34   :  { %407 = vmatprep.subr.bf16.mxu0 %v677_v44 }
  0x37   :  { %408 = vmatpush1.bf16.msra.mxu0 %v675_v45 }
  0x38   :  { %409 = vmatprep.subr.bf16.mxu0 %v680_v46 }
  0x3b   :  { %410 = vmatpush1.bf16.msra.mxu0 %v678_v47 }
  0x3c   :  { %411 = vmatprep.subr.bf16.mxu0 %v683_v48 }
  0x3f   :  { %412 = vmatpush1.bf16.msra.mxu0 %v681_v49 }
  0x42   :  { %430 = vmatmul.mubr.bf16.vlgmr.msra.gmra.mrb[4].mxu0 %v656_v33 }
  0xf5   :  { %v345_v55 = vpop.f32.mrb[0].mxu0 }
  0xf6   :  { %v445_v56 = vrot.slane %v345_v55, 7  ;;  %v347_v57 = vpop.f32.mrb[1].mxu0 }
  0xf7   :  { %v446_v59 = vrot.slane %v347_v57, 7  ;;  %v349_v60 = vpop.f32.mrb[2].mxu0  ;;  %v388_v63 = vpop.f32.mrb[0].mxu1 }
  0xf8   :  { %v447_v61 = vrot.slane %v349_v60, 7  ;;  %v351_v62 = vpop.f32.mrb[3].mxu0  ;;  %v455_v0 = vsel %vm444_vm0, 0.0, %v445_v56  ;;  %v390_v3 = vpop.f32.mrb[1].mxu1 }
  0xf9   :  { %v449_v1 = vrot.slane %v351_v62, 7  ;;  %v503_v2 = vsel %vm856_vm1, 0.0, %v455_v0  ;;  %v456_v4 = vsel %vm444_vm0, 0.0, %v446_v59  ;;  %v392_v7 = vpop.f32.mrb[2].mxu1 }
  0xfa   :  { %v507_v5 = vadd.f32 %v503_v2, %v388_v63  ;;  %v504_v6 = vsel %vm856_vm1, 0.0, %v456_v4  ;;  %v448_v8 = vsel %vm444_vm0, %v445_v56, %v447_v61  ;;  %v394_v11 = vpop.f32.mrb[3].mxu1 }
  0xfb   :  { %v508_v9 = vadd.f32 %v504_v6, %v390_v3  ;;  %v505_v10 = vsel %vm502_vm2, 0.0, %v448_v8  ;;  %v450_v12 = vsel %vm444_vm0, %v446_v59, %v449_v1 }
  0xfc   :  { %v509_v13 = vadd.f32 %v505_v10, %v392_v7  ;;  %v506_v14 = vsel %vm502_vm2, 0.0, %v450_v12 }
  0xfd   :  { %v510_v15 = vadd.f32 %v506_v14, %v394_v11 }
 0x115   :  { %v431_v16 = vpop.f32.mrb[4].mxu0 }
 0x116   :  { %v433_v17 = vpop.f32.mrb[5].mxu0  ;;  %v462_v23 = vrot.slane %v431_v16, 1 }
 0x117   :  { %v435_v20 = vpop.f32.mrb[6].mxu0  ;;  %v465_v27 = vrot.slane %v433_v17, 1 }
 0x118   :  { %v463_v24 = vrot.slane %v435_v20, 1  ;;  %v437_v26 = vpop.f32.mrb[7].mxu0 }
 0x119   :  { %v466_v28 = vrot.slane %v437_v26, 1 }
 0x11a   :  { %v464_v29 = vsel %vm461_vm3, %v462_v23, %v463_v24  ;;  %v472_v30 = vsel %vm461_vm3, %v463_v24, 0.0 }
 0x11b   :  { %v513_v33 = vsel %vm871_vm4, 0.0, %v464_v29  ;;  %v515_v34 = vsel %vm875_vm5, 0.0, %v472_v30  ;;  %v467_v35 = vsel %vm461_vm3, %v465_v27, %v466_v28  ;;  %v473_v36 = vsel %vm461_vm3, %v466_v28, 0.0 }
 0x11c   :  { %v519_v37 = vadd.f32 %v515_v34, %v509_v13  ;;  %v514_v38 = vsel %vm871_vm4, 0.0, %v467_v35  ;;  %v516_v39 = vsel %vm875_vm5, 0.0, %v473_v36  ;;  %v517_v40 = vadd.f32 %v513_v33, %v507_v5 }
 0x11d   :  { %v520_v41 = vadd.f32 %v516_v39, %v510_v15  ;;  %v518_v42 = vadd.f32 %v514_v38, %v508_v9 }
 0x11e   :  { %v533_v43 = vadd.f32 %v526_v32, %v517_v40  ;;  %v535_v44 = vadd.f32 %v526_v32, %v519_v37 }
 0x11f   :  { %v536_v45 = vadd.f32 %v530_v31, %v520_v41  ;;  %v534_v46 = vadd.f32 %v530_v31, %v518_v42 }
 0x120   :  { %v537_v47 = vmax.f32 %v533_v43, 0.0  ;;  %v539_v48 = vmax.f32 %v535_v44, 0.0 }
 0x121   :  { %v538_v49 = vmax.f32 %v534_v46, 0.0  ;;  %v540_v50 = vmax.f32 %v536_v45, 0.0 }
 0x123   :  { %v541_v51 = vmax.f32 %v537_v47, %v538_v49  ;;  %v542_v52 = vmax.f32 %v539_v48, %v540_v50 }
 0x125   :  { %545 = vrot.lane.b32.xlu0 %v541_v51, %s685_s2 }
 0x129   :  { %547 = vrot.lane.b32.xlu0 %v542_v52, %s685_s2 }
 0x197   :  { %v546_v53 = vpop.permute.xlu0 %545 }
 0x198   :  { %v551_v54 = vmax.f32 %v541_v51, %v546_v53 }
 0x19a   :  { %554 = vst.msk [vmem:[%s900_s3] sm:$0xff] %vm553_vm6, %v551_v54 }
 0x19b   :  { %v548_v55 = vpop.permute.xlu0 %547 }
 0x19c   :  { %v552_v56 = vmax.f32 %v542_v52, %v548_v55 }
 0x19e   :  { %555 = vst.msk [vmem:[%s900_s3 + $0x8] sm:$0xff] %vm553_vm6, %v552_v56 }

</bundles_post_ra>
